<compile_context>
chip_gen: v6e
topology: v6e:2x2x1
jax: 0.10.0
libtpu: 0.0.40
codegen_flags: <defaults>
</compile_context>

<pallas_src>
import jax
import jax.numpy as jnp
from jax.experimental import pallas as pl
from jax.experimental.pallas import tpu as pltpu

_LANES = 128
_SUBLANES = 8
# Default tile: 8192 rows x 128 lanes x 4 B = 4 MiB per block.
_DEFAULT_BLOCK_ROWS = 8192
# Below this element count the launch + per-step overhead dominates; a fused
# XLA multiply (one read, one write) is as fast or faster.
_DEFAULT_TINY_N = 256 * 1024


def _mul_scalar_kernel(b_ref, a_ref, o_ref):
    # b_ref: SMEM (1,) scalar; a_ref / o_ref: VMEM (block_rows, 128) tiles.
    o_ref[...] = a_ref[...] * b_ref[0]


def _round_up(x, m):
    return (x + m - 1) // m * m


def elementwise_flatten_broadcast(a, b, *, max_block_rows=_DEFAULT_BLOCK_ROWS,
                                  tiny_n=_DEFAULT_TINY_N):
    """a: float32 [N]; b: float32 0-d scalar. Returns a * b.flatten(-1, -1)."""
    N = a.shape[0]
    a = a.astype(jnp.float32)
    # b.flatten(-1, -1) on a 0-d tensor -> shape (1,); broadcasts against a.
    b1 = jnp.reshape(b, (1,)).astype(jnp.float32)

    if N == 0 or N <= tiny_n:
        # Fixed-overhead regime: plain XLA multiply (same semantics).
        return a * b1[0]

    # --- sublane/lane-dense layout: view a as (rows, 128) -------------------
    rows = pl.cdiv(N, _LANES)
    padded_n = rows * _LANES

    if padded_n == N:
        # Free metadata reshape: no extra HBM pass.
        a2 = a.reshape(rows, _LANES)
    else:
        # Pad at most 127 elements to reach lane alignment.
        a2 = jnp.pad(a, (0, padded_n - N)).reshape(rows, _LANES)

    # Block rows: multiple of 8 sublanes, capped at max_block_rows (~4 MiB f32)
    # and small enough that mid-size N still yields >= 4 blocks so both v7x
    # TensorCores get work and the DMA pipeline has steps to overlap.
    block_rows = max(_SUBLANES,
                     min(max_block_rows,
                         _round_up(pl.cdiv(rows, 4), _SUBLANES)))
    # Last block may extend past `rows`; Pallas masks the edge writes.
    grid = (pl.cdiv(rows, block_rows),)

    out2 = pl.pallas_call(
        _mul_scalar_kernel,
        out_shape=jax.ShapeDtypeStruct((rows, _LANES), jnp.float32),
        grid=grid,
        in_specs=[
            pl.BlockSpec(memory_space=pltpu.MemorySpace.SMEM),     # scalar b
            pl.BlockSpec((block_rows, _LANES), lambda i: (i, 0)),  # tiled a
        ],
        out_specs=pl.BlockSpec((block_rows, _LANES), lambda i: (i, 0)),
        compiler_params=pltpu.CompilerParams(
            dimension_semantics=("parallel",),     # shard tiles across TCs (v7x)
            vmem_limit_bytes=32 * 1024 * 1024,     # 4 MiB blocks, 2x buffered in+out
        ),
    )(b1, a2)

    out = out2.reshape(padded_n)
    if padded_n != N:
        out = out[:N]
    return out


if __name__ == "__main__":
    key = jax.random.PRNGKey(0)
    ka, kb = jax.random.split(key)
    b = jax.random.normal(kb, (), dtype=jnp.float32)  # 0-d scalar, like torch []

    # 1) Lane-aligned N (zero-copy path) with a ragged last block:
    #    rows = 40, block_rows = 16 -> grid of 3 blocks, last block masked.
    n1 = 40 * 128
    a1 = jax.random.normal(ka, (n1,), dtype=jnp.float32)
    o1 = jax.block_until_ready(
        elementwise_flatten_broadcast(a1, b, max_block_rows=16, tiny_n=0))
    assert o1.shape == (n1,) and o1.dtype == jnp.float32
    assert jnp.allclose(o1, a1 * b, rtol=1e-6, atol=1e-6)

    # 2) Non-lane-aligned N (<=127-element pad + tail slice), multi-tile grid:
    #    rows = 40, block_rows = 8 -> grid of 5 blocks.
    n2 = 5000
    a2 = jax.random.normal(ka, (n2,), dtype=jnp.float32)
    o2 = jax.block_until_ready(
        elementwise_flatten_broadcast(a2, b, max_block_rows=8, tiny_n=0))
    assert o2.shape == (n2,) and o2.dtype == jnp.float32
    assert jnp.allclose(o2, a2 * b, rtol=1e-6, atol=1e-6)

    # 3) Default config: aligned N above the tiny cutoff goes through Pallas
    #    (rows = 3072, block_rows = 768 -> 4 evenly-split blocks).
    n3 = 384 * 1024
    a3 = jax.random.normal(ka, (n3,), dtype=jnp.float32)
    o3 = jax.block_until_ready(elementwise_flatten_broadcast(a3, b))
    assert o3.shape == (n3,)
    assert jnp.allclose(o3, a3 * b, rtol=1e-6, atol=1e-6)

    # 4) Tiny-N path (pure XLA fallback) still matches the module semantics.
    a4 = jax.random.normal(ka, (512,), dtype=jnp.float32)
    o4 = jax.block_until_ready(elementwise_flatten_broadcast(a4, b))
    assert o4.shape == (512,)
    assert jnp.allclose(o4, a4 * b, rtol=1e-6, atol=1e-6)

    print("KERNEL_OK")
</pallas_src>

<mosaic_0001>
module attributes {stable_mosaic.version = 11 : i64} {
  func.func @_mul_scalar_kernel(%arg0: i32, %arg1: memref<1xf32, #tpu.memory_space<smem>>, %arg2: memref<16x128xf32, #tpu.memory_space<vmem>>, %arg3: memref<16x128xf32, #tpu.memory_space<vmem>>) attributes {dimension_semantics = [#tpu.dimension_semantics<parallel>], iteration_bounds = array<i64: 3>, scalar_prefetch = 0 : i64, scratch_operands = 0 : i64, tpu.core_type = #tpu.core_type<tc>, window_params = [{transform_indices = @transform_0, window_bounds = array<i64: 1>}, {transform_indices = @transform_1, window_bounds = array<i64: 16, 128>}, {transform_indices = @transform_2, window_bounds = array<i64: 16, 128>}]} {
    %c0 = arith.constant 0 : index
    %c0_0 = arith.constant 0 : index
    %0 = vector.load %arg2[%c0, %c0_0] : memref<16x128xf32, #tpu.memory_space<vmem>>, vector<16x128xf32>
    %c0_1 = arith.constant 0 : index
    %1 = memref.load %arg1[%c0_1] : memref<1xf32, #tpu.memory_space<smem>>
    %2 = vector.broadcast %1 : f32 to vector<16x128xf32>
    %3 = arith.mulf %0, %2 : vector<16x128xf32>
    %c0_2 = arith.constant 0 : index
    %c0_3 = arith.constant 0 : index
    %4 = vector.load %arg3[%c0_2, %c0_3] : memref<16x128xf32, #tpu.memory_space<vmem>>, vector<16x128xf32>
    tpu.vector_store %arg3[%c0_2, %c0_3], %3 {strides = array<i32>} : memref<16x128xf32, #tpu.memory_space<vmem>>, vector<16x128xf32>,
    return
  }
  func.func @transform_0(%arg0: i32) -> i32 {
    %c0_i32 = arith.constant 0 : i32
    %c0_i32_0 = arith.constant 0 : i32
    return %c0_i32 : i32
  }
  func.func @transform_1(%arg0: i32) -> (i32, i32) {
    %c0_i32 = arith.constant 0 : i32
    %c0_i32_0 = arith.constant 0 : i32
    return %arg0, %c0_i32 : i32, i32
  }
  func.func @transform_2(%arg0: i32) -> (i32, i32) {
    %c0_i32 = arith.constant 0 : i32
    %c0_i32_0 = arith.constant 0 : i32
    return %arg0, %c0_i32 : i32, i32
  }
}

</mosaic_0001>

<bundles_post_ra>
// kernel: tpu_custom_call.1
= control target key start
LH: loop header
LB: loop body
LE: loop exit
PB: predicated region body
PF: predicated region fallthrough
CT: control target
= control target key end

     0   :  { %s628_s0 = inlined_call_operand.<no memory space> [shape: f32[1], index: 0, kind: input, shape index: {}]   ;;  %s629_s1 = inlined_call_operand.hbm [shape: f32[40,128], index: 1, kind: input, shape index: {}]   ;;  %s630_s2 = inlined_call_operand.hbm [shape: f32[40,128], index: 2, kind: output, shape index: {}]  }
   0x1   :  { %7 = sst [smem:[#allocation2]] %s628_s0 }
   0x2   :  { %8 = vsyncpa [#allocation4], 0 }
   0x3   :  { %10 = vsyncpa [#allocation4 + $0x1], 0 }
   0x4   :  { %11 = vsyncpa [#allocation5], 0 }
   0x5   :  { %13 = vsyncpa [#allocation5 + $0x1], 0  ;;  %s463_s11 = smov 0   ;;  %s465_s12 = smov 0  }
   0x6   :  { %s467_s13 = smov 0   ;;  %s469_s14 = smov 0  }
   0x7 LB: > { %s484_s0 = sadd.s32 4294967295, %s437_s14   ;;  %s280_s15 = sadd.s32 4294967294, %s437_s14   ;;  %s437_s14 = sphi %s469_s14, %s638_s14   ;;  %s433_s13 = sphi %s467_s13, %s637_s13   ;;  %s429_s12 = sphi %s465_s12, %s636_s12   ;;  %s425_s11 = sphi %s463_s11, %s635_s11  }
   0x8   : > { %s488_s16 = sadd.s32 1, %s437_s14   ;;  %s47_s17 = sadd.s32 1, %s433_s13 }
   0x9   : > { %s44_s18 = ssub.s32 %s437_s14, %s488_s16  ;;  %p54_p0 = scmp.ne.s32.totalorder %s433_s13, %s429_s12 }
   0xa   : > { %p45_p1 = scmp.eq.s32.totalorder %s44_s18, 0  ;;  %p55_p2 = scmp.eq.s32.totalorder %s437_s14, 0 }
   0xb   : > { %p60_p3 = scmp.ne.s32.totalorder %s429_s12, %s425_s11  ;;  %p61_p4 = scmp.eq.s32.totalorder %s484_s0, 0 }
   0xc   : > { %s500_s19 = scalar_select %p45_p1, %s433_s13, %s47_s17  }
   0xd   : > { %p56_p5 = por %p55_p2, %p54_p0  ;;  %p502_p6 = por %p61_p4, %p60_p3 }
   0xe   : > { %p84_p7 = scmp.eq.s32.totalorder %s484_s0, 2  ;;  %p90_p8 = scmp.eq.s32.totalorder %s280_s15, 2 }
   0xf   : > { %p282_p11 = scmp.ge.s32.totalorder %s437_s14, 3 }
  0x10   : > { %p507_p9 = por %p84_p7, %p54_p0  ;;  %p511_p10 = por %p90_p8, %p60_p3 }
  0x11   : > { %109 = sbr.rel (%p282_p11) target bundleno = 54 (0x36), region = 20 }
  0x12   : > { %s633_s22 = scalar_select %p511_p10, 1, 0 }
  0x16   : > { %112 = sbr.rel (!%p56_p5) target bundleno = 54 (0x36), region = 24  ;;  %s113_s23 = sand.u32 (%p56_p5), 1, %s433_s13  }
  0x17   : > { %s284_s24 = sshll.u32 (%p56_p5), %s437_s14, 1  ;;  %s283_s25 = sshll.u32 (%p56_p5), %s113_s23, 4 }
  0x18   : > { %s119_s26 = ssub.s32 (%p56_p5), 5, %s284_s24  ;;  %s521_s29 = scalar_lea.sflag (%p56_p5), [#allocation4], %s113_s23 }
  0x19   : > { %p120_p12 = scmp.lt.s32.totalorder (%p56_p5), %s119_s26, 2  ;;  %s117_s30 = scalar_lea.vmem (%p56_p5), [#allocation3], %s283_s25 }
  0x1b   : > { %s640_s26 = smov (!%p120_p12, %s119_s26), 2 }
  0x1c   : > { %s518_s27 = sshll.u32 %s640_s26, 7 }
  0x1d   : > { %s124_s28 = ssub.s32 256, %s518_s27 }
  0x1e   : > { %125 = vsyncadd %s521_s29, %s124_s28  ;;  %p286_p13 = scmp.ne.s32.totalorder %s518_s27, 0  ;;  %s302_s3 = sshll.u32 %s437_s14, 8 }
  0x1f   : > { %s529_s6 = scalar_lea.hbm %s629_s1, %s302_s3  ;;  %s130_s7 = sshll.u32 %s117_s30, 4  ;;  %s531_s7 = int_to_ptr.vmem [resolvable:$true] %s130_s7 }
  0x20   : > { %s347_s8 = scalar_lea.hbm %s529_s6, %s518_s27  ;;  %s351_s15 = scalar_lea.hbm %s629_s1, 640 }
  0x21   : > { %p348_p0 = scmp.ne.s32.totalorder %s529_s6, %s347_s8  ;;  %p352_p3 = scmp.lt.s32.totalorder %s529_s6, %s629_s1 }
  0x22   : > { %p353_p4 = scmp.lt.s32.totalorder %s351_s15, %s347_s8 }
  0x23   : > { %p349_p1 = pnand %p348_p0, %p286_p13 }
  0x24   : > { %p354_p5 = por %p353_p4, %p352_p3 }
  0x25   : > { %p350_p2 = pneg %p349_p1 }
  0x27   : > { %p355_p7 = pnand %p354_p5, %p350_p2 }
  0x29   : > { %358 = shalt.err (!%p355_p7)
}
  0x2a   : > { %s359_s23 = scalar_lea.vmem %s531_s7, %s518_s27  ;;  %s439_s24 = smov [#allocation3]  }
  0x2b   : > { %p360_p8 = scmp.ne.s32.totalorder %s531_s7, %s359_s23  ;;  %s363_s25 = sshll.u32 %s439_s24, 4  ;;  %s364_s25 = int_to_ptr.vmem [resolvable:$false] %s363_s25 }
  0x2c   : > { %s365_s26 = scalar_lea.vmem %s364_s25, 512  ;;  %p366_p0 = scmp.lt.s32.totalorder %s531_s7, %s364_s25 }
  0x2d   : > { %p361_p11 = pnand %p360_p8, %p286_p13  ;;  %p367_p1 = scmp.lt.s32.totalorder %s365_s26, %s359_s23 }
  0x2f   : > { %p362_p12 = pneg %p361_p11  ;;  %p368_p10 = por %p367_p1, %p366_p0 }
  0x31   : > { %p369_p3 = pnand %p368_p10, %p362_p12 }
  0x33   : > { %372 = shalt.err (!%p369_p3)
}
  0x34   : > { %s440_s28 = smov 128   ;;  %s441_s30 = smov 8  }
  0x35   : > { %136 = dma.hbm_to_vmem [thread:$0]  (%p286_p13), %s529_s6, %s518_s27, %s531_s7, %s521_s29, %s440_s28, %s440_s28, %s441_s30  }
  0x36 PF: > { %p290_p2 = scmp.ge.s32.totalorder %s437_s14, 1  ;;  %p138_p4 = scmp.lt.s32.totalorder %s437_s14, 4 }
  0x38   : > { %p139_p5 = pnand %p290_p2, %p138_p4 }
  0x39   : > { %s560_s3 = sand.u32 (!%p139_p5), 1, %s429_s12  }
  0x3a   : > { %142 = sbr.rel (%p139_p5) target bundleno = 101 (0x65), region = 28  ;;  %s291_s4 = sshll.u32 (!%p139_p5), %s560_s3, 4 }
  0x3b   : > { %s145_s5 = scalar_lea.sflag (!%p139_p5), [#allocation4], %s560_s3  ;;  %s148_s8 = scalar_lea.vmem (!%p139_p5), [#allocation3], %s291_s4 }
  0x3f   : > { %416 = dma.done.wait (%p502_p6), %s145_s5, 256  }
  0x40   : > { %418 = vsyncadd (%p502_p6), %s145_s5, 4294967040  ;;  %s181_s27 = sld [smem:[#allocation2]]  ;;  %v179_v0 = vld [vmem:[%s148_s8] sm:$0xff]  ;;  %v180_v2 = vld [vmem:[%s148_s8 + $0x8] sm:$0xff]  ;;  %s168_s29 = scalar_lea.vmem [#allocation6], %s291_s4 }
  0x41   : > { %s188_s6 = scalar_lea.sflag [#allocation5], %s560_s3  ;;  %s294_s7 = sshll.u32 (%p507_p9), %s484_s0, 1 }
  0x42   : > { %s196_s9 = ssub.s32 (%p507_p9), 5, %s294_s7 }
  0x43   : > { %p197_p10 = scmp.lt.s32.totalorder (%p507_p9), %s196_s9, 2 }
  0x45   : > { %194 = sbr.rel (!%p507_p9) target bundleno = 101 (0x65), region = 36 }
  0x46   : > { %v182_v1 = vstv %s181_s27 }
  0x47   : > { %v183_v3 = vmul.f32 %v182_v1, %v179_v0  ;;  %v184_v4 = vmul.f32 %v182_v1, %v180_v2 }
  0x49   : > { %185 = vst [vmem:[%s168_s29] sm:$0xff] %v183_v3  ;;  %186 = vst [vmem:[%s168_s29 + $0x8] sm:$0xff] %v184_v4 }
  0x4a   : > { %s642_s9 = smov (!%p197_p10, %s196_s9), 2 }
  0x4b   : > { %s572_s20 = sshll.u32 %s642_s9, 7 }
  0x4c   : > { %s201_s10 = ssub.s32 256, %s572_s20 }
  0x4d   : > { %202 = vsyncadd %s188_s6, %s201_s10  ;;  %p296_p6 = scmp.ne.s32.totalorder %s572_s20, 0  ;;  %s303_s15 = sshll.u32 %s484_s0, 8 }
  0x4e   : > { %s582_s18 = scalar_lea.hbm %s630_s2, %s303_s15  ;;  %s207_s23 = sshll.u32 %s168_s29, 4  ;;  %s584_s23 = int_to_ptr.vmem [resolvable:$true] %s207_s23 }
  0x4f   : > { %s373_s24 = scalar_lea.vmem %s584_s23, %s572_s20  ;;  %s442_s25 = smov [#allocation6]  }
  0x50   : > { %p374_p9 = scmp.ne.s32.totalorder %s584_s23, %s373_s24  ;;  %s377_s26 = sshll.u32 %s442_s25, 4  ;;  %s378_s26 = int_to_ptr.vmem [resolvable:$false] %s377_s26 }
  0x51   : > { %s379_s0 = scalar_lea.vmem %s378_s26, 512  ;;  %p380_p8 = scmp.lt.s32.totalorder %s584_s23, %s378_s26 }
  0x52   : > { %p375_p13 = pnand %p374_p9, %p296_p6  ;;  %p381_p11 = scmp.lt.s32.totalorder %s379_s0, %s373_s24 }
  0x54   : > { %p376_p7 = pneg %p375_p13  ;;  %p382_p12 = por %p381_p11, %p380_p8 }
  0x56   : > { %p383_p0 = pnand %p382_p12, %p376_p7 }
  0x58   : > { %386 = shalt.err (!%p383_p0)
}
  0x59   : > { %s387_s28 = scalar_lea.hbm %s582_s18, %s572_s20  ;;  %s391_s5 = scalar_lea.hbm %s630_s2, 640 }
  0x5a   : > { %p388_p1 = scmp.ne.s32.totalorder %s582_s18, %s387_s28  ;;  %p392_p4 = scmp.lt.s32.totalorder %s582_s18, %s630_s2 }
  0x5b   : > { %p393_p5 = scmp.lt.s32.totalorder %s391_s5, %s387_s28 }
  0x5c   : > { %p389_p3 = pnand %p388_p1, %p296_p6 }
  0x5d   : > { %p394_p10 = por %p393_p5, %p392_p4 }
  0x5e   : > { %p390_p2 = pneg %p389_p3 }
  0x60   : > { %p395_p9 = pnand %p394_p10, %p390_p2 }
  0x62   : > { %398 = shalt.err (!%p395_p9)
}
  0x63   : > { %s443_s29 = smov 128   ;;  %s444_s7 = smov 8  }
  0x64   : > { %213 = dma.vmem_to_hbm [thread:$0]  (%p296_p6), %s584_s23, %s572_s20, %s582_s18, %s188_s6, %s443_s29, %s443_s29, %s444_s7  }
  0x65 PF: > { %p310_p13 = scmp.ge.s32.totalorder %s437_s14, 2  ;;  %s222_s9 = sand.u32 1, %s425_s11  }
  0x66   : > { %p634_p7 = scmp.ne.s32.totalorder %s633_s22, 0  ;;  %s223_s10 = scalar_lea.sflag [#allocation5], %s222_s9 }
  0x68   : > { %p307_p8 = pnand %p310_p13, %p634_p7 }
  0x6a   : > { %p308_p11 = pneg %p307_p8 }
  0x6c   : > { %420 = dma.done.wait (%p308_p11), %s223_s10, 256  }
  0x6d   : > { %422 = vsyncadd (%p308_p11), %s223_s10, 4294967040  ;;  %p16_p12 = scmp.ge.s32.totalorder %s488_s16, 5   ;;  %s635_s11 = smov %s429_s12 }
  0x6e   : > { %s636_s12 = smov %s433_s13  ;;  %s637_s13 = smov %s500_s19 }
  0x6f   : > { %s638_s14 = smov %s488_s16  ;;  %18 = sbr.rel (!%p16_p12) target bundleno = 7 (0x7), region = 73 }
  0x74   :  { %228 = vsyncpa [#allocation4], 1 }
  0x75   :  { %230 = vsyncpa [#allocation4 + $0x1], 1 }
  0x76   :  { %231 = vsyncpa [#allocation5], 1 }
  0x77   :  { %233 = vsyncpa [#allocation5 + $0x1], 1 }

</bundles_post_ra>
